<compile_context>
chip_gen: v7x
topology: tpu7x:2x2x1
jax: 0.10.0
libtpu: 0.0.40
codegen_flags: <defaults>
</compile_context>

<pallas_src>
import functools

import jax
import jax.numpy as jnp
from jax.experimental import pallas as pl
from jax.experimental.pallas import tpu as pltpu

# small, module-consistent shapes
B = 2     # batch ("texts")
S = 8     # sequence length (tokens per text)
H = 32    # hidden / text-feature dim
V = 50    # vocab size
C = 8     # number of concepts
E = 16    # concept-embedding dim

V_PAD = 128          # vocab padded to one full lane width for the one-hot matmul
BS = B * S


def _qsr_kernel(ids_ref, w_eff_ref, b_enc_ref, pool_ref, w_c_ref, b_c_ref,
                eproto_ref, *out_refs, return_features):
    """Fused gather+encoder + pooling + concept-detector forward.

    ids_ref    : [B*S, 1]   int32 VMEM  token ids
    w_eff_ref  : [V_PAD, H] bf16  VMEM  pre-folded emb @ W_enc (zero-padded rows)
    b_enc_ref  : [1, H]     f32   VMEM
    pool_ref   : [B, B*S]   bf16  VMEM  constant mean-pool matrix (1/S per block)
    w_c_ref    : [H, C]     bf16  VMEM  concept weights (untransposed)
    b_c_ref    : [1, C]     f32   VMEM
    eproto_ref : [C, C*E]   f32   VMEM  block-diagonal prototype expansion
    out_refs   : cemb[B,C*E], logits[B,C] (+ tfeat[B,H], seq[B*S,H]) f32 VMEM
    """
    # one-hot "gather" on the VPU; ids >= V land on zero-padded table rows.
    ids = ids_ref[...]                                                # [BS, 1]
    onehot = (jax.lax.broadcasted_iota(jnp.int32, (BS, V_PAD), 1)
              == ids).astype(jnp.bfloat16)                            # [BS, V_PAD]

    # text encoder: tanh(onehot @ (emb @ W_enc) + b)  -> per-token features
    henc = jnp.tanh(
        jnp.dot(onehot, w_eff_ref[...], preferred_element_type=jnp.float32)
        + b_enc_ref[...])                                             # [BS, H] f32

    # mean-pool over the sequence as a tiny constant matmul (no sublane reduce)
    tfeat = jnp.dot(pool_ref[...], henc.astype(jnp.bfloat16),
                    preferred_element_type=jnp.float32)               # [B, H]

    # concept logits on the MXU (vector-extended slot is otherwise idle)
    logits = (jnp.dot(tfeat.astype(jnp.bfloat16), w_c_ref[...],
                      preferred_element_type=jnp.float32)
              + b_c_ref[...])                                         # [B, C]

    # sigmoid-gated prototypes: gate @ block_diag(proto) -> lane-dense [B, C*E]
    gate = jax.nn.sigmoid(logits)                                     # [B, C]
    cemb = jnp.dot(gate, eproto_ref[...],
                   preferred_element_type=jnp.float32)                # [B, C*E]

    cemb_ref, logits_ref = out_refs[0], out_refs[1]
    cemb_ref[...] = cemb
    logits_ref[...] = logits
    if return_features:
        tfeat_ref, seq_ref = out_refs[2], out_refs[3]
        tfeat_ref[...] = tfeat
        seq_ref[...] = henc


def init_params(key):
    """Raw module parameters (what the PyTorch module would hold)."""
    k = jax.random.split(key, 4)
    return {
        "emb":   jax.random.normal(k[0], (V, H), jnp.float32) * 0.02,
        "w_enc": jax.random.normal(k[1], (H, H), jnp.float32) * 0.05,
        "b_enc": jnp.zeros((1, H), jnp.float32),
        "w_c":   jax.random.normal(k[2], (H, C), jnp.float32) * 0.05,
        "b_c":   jnp.zeros((1, C), jnp.float32),
        "proto": jax.random.normal(k[3], (C, E), jnp.float32) * 0.1,
    }


def prepare_params(params):
    """One-time layout/precision prep (hoisted out of the per-call wrapper)."""
    # pre-fold the embedding table into the encoder weights; zero-pad the vocab
    # dimension to a full 128-lane contraction for the one-hot matmul.
    w_eff = params["emb"] @ params["w_enc"]                           # [V, H] f32
    w_eff = jnp.pad(w_eff, ((0, V_PAD - V), (0, 0))).astype(jnp.bfloat16)
    # constant mean-pooling matrix: pool[b, r] = 1/S iff r belongs to batch b.
    pool = ((jnp.arange(BS)[None, :] // S) == jnp.arange(B)[:, None])
    pool = (pool.astype(jnp.float32) / S).astype(jnp.bfloat16)        # [B, BS]
    # block-diagonal prototype expansion: eproto[c, c*E + e] = proto[c, e].
    mask = (jnp.arange(C * E)[None, :] // E) == jnp.arange(C)[:, None]
    proto_rep = params["proto"][:, jnp.arange(C * E) % E]             # [C, C*E]
    eproto = jnp.where(mask, proto_rep, 0.0).astype(jnp.float32)      # [C, C*E]
    return {
        "w_eff": w_eff,
        "b_enc": params["b_enc"].astype(jnp.float32),
        "pool": pool,
        "w_c": params["w_c"].astype(jnp.bfloat16),
        "b_c": params["b_c"].astype(jnp.float32),
        "eproto": eproto,
    }


@functools.partial(jax.jit, static_argnames=("return_features",))
def quasi_symbolic_reasoning(token_ids, kparams, return_features=False):
    """Mirrors QuasiSymbolicReasoning.forward (token ids stand in for `texts`)."""
    ids = token_ids.reshape(BS, 1).astype(jnp.int32)

    vmem = pl.BlockSpec(memory_space=pltpu.MemorySpace.VMEM)

    out_shapes = [jax.ShapeDtypeStruct((B, C * E), jnp.float32),
                  jax.ShapeDtypeStruct((B, C), jnp.float32)]
    if return_features:
        out_shapes += [jax.ShapeDtypeStruct((B, H), jnp.float32),
                       jax.ShapeDtypeStruct((BS, H), jnp.float32)]

    # advisory cost hint so XLA can schedule/overlap around the tiny custom call
    flops = 2 * (BS * V_PAD * H + B * BS * H + B * H * C + B * C * (C * E))
    out_bytes = 4 * sum(s.shape[0] * s.shape[1] for s in out_shapes)
    bytes_accessed = (4 * BS + 2 * V_PAD * H + 4 * H + 2 * B * BS
                      + 2 * H * C + 4 * C + 4 * C * (C * E) + out_bytes)
    cost = pl.CostEstimate(flops=flops, transcendentals=BS * H + B * C,
                           bytes_accessed=bytes_accessed)

    outs = pl.pallas_call(
        functools.partial(_qsr_kernel, return_features=return_features),
        out_shape=tuple(out_shapes),
        in_specs=[vmem] * 7,
        out_specs=tuple([vmem] * len(out_shapes)),
        cost_estimate=cost,
        # NOTE: no grid at B=2 (a grid is a serial loop + ~0.35us/step on one
        # TC).  If B grows, add grid=(B//TB,) with
        # dimension_semantics=("parallel",) so v7x's 2 TensorCores share work,
        # and once V*H no longer fits VMEM (64 MiB on v7x) switch the folded
        # table to memory_space=pl.ANY + a scalar-prefetch-driven DMA gather.
    )(ids, kparams["w_eff"], kparams["b_enc"], kparams["pool"],
      kparams["w_c"], kparams["b_c"], kparams["eproto"])

    ret = {"concept_logits": outs[1],
           "concept_embeddings": outs[0].reshape(B, C, E)}
    if return_features:
        ret["text_features"] = outs[2]
        ret["sequence_features"] = outs[3].reshape(B, S, H)
    return ret


def _reference(token_ids, params):
    """Pure-JAX reference with the same concrete encoder/detector semantics."""
    seq = params["emb"][token_ids]                                     # [B,S,H]
    henc = jnp.tanh(jnp.einsum("bsh,hk->bsk", seq, params["w_enc"])
                    + params["b_enc"])                                 # [B,S,H]
    tfeat = jnp.mean(henc, axis=1)                                     # [B,H]
    logits = tfeat @ params["w_c"] + params["b_c"]                     # [B,C]
    gate = jax.nn.sigmoid(logits)
    cemb = gate[:, :, None] * params["proto"][None, :, :]              # [B,C,E]
    return {"concept_logits": logits, "concept_embeddings": cemb,
            "text_features": tfeat, "sequence_features": henc}


if __name__ == "__main__":
    key = jax.random.PRNGKey(0)
    pkey, dkey = jax.random.split(key)
    params = init_params(pkey)
    kparams = prepare_params(params)

    # deterministic "texts" as token-id sequences
    token_ids = jax.random.randint(dkey, (B, S), 0, V, dtype=jnp.int32)

    out = quasi_symbolic_reasoning(token_ids, kparams, return_features=True)
    out_fast = quasi_symbolic_reasoning(token_ids, kparams, return_features=False)
    jax.block_until_ready((out, out_fast))

    assert out["concept_logits"].shape == (B, C)
    assert out["concept_embeddings"].shape == (B, C, E)
    assert out["text_features"].shape == (B, H)
    assert out["sequence_features"].shape == (B, S, H)
    assert set(out_fast) == {"concept_logits", "concept_embeddings"}

    ref = _reference(token_ids, params)
    for name in ("concept_logits", "concept_embeddings",
                 "text_features", "sequence_features"):
        assert jnp.allclose(out[name], ref[name], rtol=2e-3, atol=2e-3), name
    assert jnp.allclose(out_fast["concept_logits"], out["concept_logits"],
                        rtol=1e-6, atol=1e-6)
    assert jnp.allclose(out_fast["concept_embeddings"], out["concept_embeddings"],
                        rtol=1e-6, atol=1e-6)

    print("KERNEL_OK")
</pallas_src>

<mosaic_0001>
module attributes {stable_mosaic.version = 11 : i64} {
  func.func @_qsr_kernel(%arg0: memref<16x1xi32, #tpu.memory_space<vmem>>, %arg1: memref<128x32xbf16, #tpu.memory_space<vmem>>, %arg2: memref<1x32xf32, #tpu.memory_space<vmem>>, %arg3: memref<2x16xbf16, #tpu.memory_space<vmem>>, %arg4: memref<32x8xbf16, #tpu.memory_space<vmem>>, %arg5: memref<1x8xf32, #tpu.memory_space<vmem>>, %arg6: memref<8x128xf32, #tpu.memory_space<vmem>>, %arg7: memref<2x128xf32, #tpu.memory_space<vmem>>, %arg8: memref<2x8xf32, #tpu.memory_space<vmem>>, %arg9: memref<2x32xf32, #tpu.memory_space<vmem>>, %arg10: memref<16x32xf32, #tpu.memory_space<vmem>>) attributes {dimension_semantics = [], scalar_prefetch = 0 : i64, scratch_operands = 0 : i64, tpu.core_type = #tpu.core_type<tc>} {
    %c0 = arith.constant 0 : index
    %c0_0 = arith.constant 0 : index
    %0 = vector.load %arg0[%c0, %c0_0] : memref<16x1xi32, #tpu.memory_space<vmem>>, vector<16x1xi32>
    %1 = tpu.iota {dimensions = array<i32: 1>} : vector<16x128xi32>
    %2 = vector.broadcast %0 : vector<16x1xi32> to vector<16x128xi32>
    %3 = arith.cmpi eq, %1, %2 : vector<16x128xi32>
    %4 = arith.extui %3 : vector<16x128xi1> to vector<16x128xi32>
    %5 = arith.sitofp %4 : vector<16x128xi32> to vector<16x128xf32>
    %6 = arith.truncf %5 : vector<16x128xf32> to vector<16x128xbf16>
    %c0_1 = arith.constant 0 : index
    %c0_2 = arith.constant 0 : index
    %7 = vector.load %arg1[%c0_1, %c0_2] : memref<128x32xbf16, #tpu.memory_space<vmem>>, vector<128x32xbf16>
    %cst = arith.constant dense<0.000000e+00> : vector<16x32xf32>
    %8 = tpu.matmul %6, %7, %cst {dimension_numbers = #tpu.dot_dimension_numbers<[1], [0], [0], [1], [0, 0, 1, 1], [], []>} : vector<16x128xbf16>, vector<128x32xbf16>, vector<16x32xf32> -> vector<16x32xf32>
    %c0_3 = arith.constant 0 : index
    %c0_4 = arith.constant 0 : index
    %9 = vector.load %arg2[%c0_3, %c0_4] : memref<1x32xf32, #tpu.memory_space<vmem>>, vector<1x32xf32>
    %10 = vector.broadcast %9 : vector<1x32xf32> to vector<16x32xf32>
    %11 = arith.addf %8, %10 : vector<16x32xf32>
    %12 = math.tanh %11 : vector<16x32xf32>
    %c0_5 = arith.constant 0 : index
    %c0_6 = arith.constant 0 : index
    %13 = vector.load %arg3[%c0_5, %c0_6] : memref<2x16xbf16, #tpu.memory_space<vmem>>, vector<2x16xbf16>
    %14 = arith.truncf %12 : vector<16x32xf32> to vector<16x32xbf16>
    %cst_7 = arith.constant dense<0.000000e+00> : vector<2x32xf32>
    %15 = tpu.matmul %13, %14, %cst_7 {dimension_numbers = #tpu.dot_dimension_numbers<[1], [0], [0], [1], [0, 0, 1, 1], [], []>} : vector<2x16xbf16>, vector<16x32xbf16>, vector<2x32xf32> -> vector<2x32xf32>
    %16 = arith.truncf %15 : vector<2x32xf32> to vector<2x32xbf16>
    %c0_8 = arith.constant 0 : index
    %c0_9 = arith.constant 0 : index
    %17 = vector.load %arg4[%c0_8, %c0_9] : memref<32x8xbf16, #tpu.memory_space<vmem>>, vector<32x8xbf16>
    %cst_10 = arith.constant dense<0.000000e+00> : vector<2x8xf32>
    %18 = tpu.matmul %16, %17, %cst_10 {dimension_numbers = #tpu.dot_dimension_numbers<[1], [0], [0], [1], [0, 0, 1, 1], [], []>} : vector<2x32xbf16>, vector<32x8xbf16>, vector<2x8xf32> -> vector<2x8xf32>
    %c0_11 = arith.constant 0 : index
    %c0_12 = arith.constant 0 : index
    %19 = vector.load %arg5[%c0_11, %c0_12] : memref<1x8xf32, #tpu.memory_space<vmem>>, vector<1x8xf32>
    %20 = vector.broadcast %19 : vector<1x8xf32> to vector<2x8xf32>
    %21 = arith.addf %18, %20 : vector<2x8xf32>
    %22 = arith.negf %21 : vector<2x8xf32>
    %23 = math.exp %22 : vector<2x8xf32>
    %cst_13 = arith.constant 1.000000e+00 : f32
    %24 = vector.broadcast %cst_13 : f32 to vector<2x8xf32>
    %25 = arith.addf %24, %23 : vector<2x8xf32>
    %26 = arith.divf %24, %25 : vector<2x8xf32>
    %c0_14 = arith.constant 0 : index
    %c0_15 = arith.constant 0 : index
    %27 = vector.load %arg6[%c0_14, %c0_15] : memref<8x128xf32, #tpu.memory_space<vmem>>, vector<8x128xf32>
    %cst_16 = arith.constant dense<0.000000e+00> : vector<2x128xf32>
    %28 = tpu.matmul %26, %27, %cst_16 {dimension_numbers = #tpu.dot_dimension_numbers<[1], [0], [0], [1], [0, 0, 1, 1], [], []>} : vector<2x8xf32>, vector<8x128xf32>, vector<2x128xf32> -> vector<2x128xf32>
    %c0_17 = arith.constant 0 : index
    %c0_18 = arith.constant 0 : index
    %29 = vector.load %arg7[%c0_17, %c0_18] : memref<2x128xf32, #tpu.memory_space<vmem>>, vector<2x128xf32>
    tpu.vector_store %arg7[%c0_17, %c0_18], %28 {strides = array<i32>} : memref<2x128xf32, #tpu.memory_space<vmem>>, vector<2x128xf32>,
    %c0_19 = arith.constant 0 : index
    %c0_20 = arith.constant 0 : index
    %30 = vector.load %arg8[%c0_19, %c0_20] : memref<2x8xf32, #tpu.memory_space<vmem>>, vector<2x8xf32>
    tpu.vector_store %arg8[%c0_19, %c0_20], %21 {strides = array<i32>} : memref<2x8xf32, #tpu.memory_space<vmem>>, vector<2x8xf32>,
    %c0_21 = arith.constant 0 : index
    %c0_22 = arith.constant 0 : index
    %31 = vector.load %arg9[%c0_21, %c0_22] : memref<2x32xf32, #tpu.memory_space<vmem>>, vector<2x32xf32>
    tpu.vector_store %arg9[%c0_21, %c0_22], %15 {strides = array<i32>} : memref<2x32xf32, #tpu.memory_space<vmem>>, vector<2x32xf32>,
    %c0_23 = arith.constant 0 : index
    %c0_24 = arith.constant 0 : index
    %32 = vector.load %arg10[%c0_23, %c0_24] : memref<16x32xf32, #tpu.memory_space<vmem>>, vector<16x32xf32>
    tpu.vector_store %arg10[%c0_23, %c0_24], %12 {strides = array<i32>} : memref<16x32xf32, #tpu.memory_space<vmem>>, vector<16x32xf32>,
    return
  }
}

</mosaic_0001>

<bundles_post_ra>
// kernel: quasi_symbolic_reasoning.1
= control target key start
LH: loop header
LB: loop body
LE: loop exit
PB: predicated region body
PF: predicated region fallthrough
CT: control target
= control target key end

     0   :  { %16 = vsyncpa [#allocation3], 0  ;;  %v586_v1 = vmov 0   ;;  %v587_v2 = vmov 0.0   ;;  %vm588_vm0 = vmmov 0   ;;  %s760_s0 = inlined_call_operand.vmem [shape: s32[16,1], index: 0, kind: input, shape index: {}]   ;;  %s761_s1 = inlined_call_operand.vmem [shape: bf16[128,32], index: 1, kind: input, shape index: {}]   ;;  %s762_s2 = inlined_call_operand.vmem [shape: f32[1,32], index: 2, kind: input, shape index: {}]   ;;  %s763_s3 = inlined_call_operand.vmem [shape: bf16[2,16], index: 3, kind: input, shape index: {}]   ;;  %s764_s4 = inlined_call_operand.vmem [shape: bf16[32,8], index: 4, kind: input, shape index: {}]   ;;  %s765_s5 = inlined_call_operand.vmem [shape: f32[1,8], index: 5, kind: input, shape index: {}]   ;;  %s766_s6 = inlined_call_operand.vmem [shape: f32[8,128], index: 6, kind: input, shape index: {}]   ;;  %s767_s7 = inlined_call_operand.vmem [shape: f32[2,128], index: 7, kind: output, shape index: {0}]   ;;  %s768_s8 = inlined_call_operand.hbm [shape: f32[2,8], index: 8, kind: output, shape index: {1}]   ;;  %s769_s9 = inlined_call_operand.hbm [shape: f32[2,32], index: 9, kind: output, shape index: {2}]   ;;  %s770_s10 = inlined_call_operand.hbm [shape: f32[16,32], index: 10, kind: output, shape index: {3}]  }
   0x1   :  { %v33_v0 = vld [vmem:[%s760_s0] sm:$0xff]  ;;  %497 = vset.pattern.permute.xlu0 %v586_v1  ;;  %449 = vmatprep.subr.bf16.mxu0 %v587_v2  ;;  %v34_v4 = vld [vmem:[%s760_s0 + $0x8] sm:$0xff]  ;;  %v500_v6 = vld [vmem:[%s761_s1 + $0x10] sm:$0xff]  }
   0x2   :  { %v498_v3 = vld [vmem:[%s761_s1] sm:$0xff]   ;;  %38 = vperm.xlu0 %497, %v33_v0   ;;  %469 = vmatprep.subr.bf16.mxu1 %v587_v2  ;;  %v499_v5 = vld [vmem:[%s761_s1 + $0x8] sm:$0xff]  }
   0x3   :  { %450 = vmatpush3.bf16.msra.mxu0 %v498_v3  ;;  %465 = vmatprep.mubr.msk.bf16.mxu0 %vm588_vm0, %v587_v2 }
   0x4   :  { %451 = vmatprep.subr.bf16.mxu0 %v587_v2  ;;  %471 = vmatprep.mubr.msk.bf16.mxu1 %vm588_vm0, %v587_v2 }
   0x6   :  { %41 = vperm.xlu0 %497, %v34_v4  }
   0x7   :  { %452 = vmatpush3.bf16.msra.mxu0 %v499_v5 }
   0x8   :  { %453 = vmatprep.subr.bf16.mxu0 %v587_v2 }
   0x9   :  { %17 = vsyncpa [#allocation5], 0  ;;  %v501_v7 = vld [vmem:[%s761_s1 + $0x18] sm:$0xff]   ;;  %v502_v8 = vld [vmem:[%s761_s1 + $0x20] sm:$0xff]   ;;  %v35_v12 = vlaneseq  ;;  %v589_v16 = vmov 1.0|1.0  }
   0xa   :  { %v503_v9 = vld [vmem:[%s761_s1 + $0x28] sm:$0xff]   ;;  %v504_v10 = vld [vmem:[%s761_s1 + $0x30] sm:$0xff]   ;;  %v505_v11 = vld [vmem:[%s761_s1 + $0x38] sm:$0xff]   ;;  %vm234_vm4 = vcmask 261120   ;;  %vm166_vm5 = vcmask 130048   ;;  %vm362_vm6 = vcmask 254976  }
   0xb   :  { %454 = vmatpush3.bf16.msra.mxu0 %v500_v6  ;;  %v36_v14 = vand.u32 127, %v35_v12  ;;  %v415_v17 = vld [vmem:[%s762_s2] ss:$0 sm:$0xff]  ;;  %v507_v29 = vld [vmem:[%s764_s4 + $0x8] sm:$0xff]   ;;  %vm360_vm7 = vcmask 58368   ;;  %vm285_vm8 = vcmask 64512  }
   0xc   :  { %455 = vmatprep.subr.bf16.mxu0 %v587_v2  ;;  %v164_v27 = vld [vmem:[%s763_s3] sm:$0x1]  ;;  %s591_s21 = smov [#allocation2]  }
   0xd   :  { %v506_v28 = vld [vmem:[%s764_s4] sm:$0xff]  }
   0xe   :  { %v284_v35 = vld [vmem:[%s766_s6] sm:$0xff]  ;;  %s590_s6 = smov [#allocation4]  }
   0xf   :  { %456 = vmatpush3.bf16.msra.mxu0 %v501_v7  ;;  %v427_v36 = vld [vmem:[%s765_s5] ss:$0 sm:$0xff]  ;;  %s384_s20 = sshll.u32 %s590_s6, 4  ;;  %s374_s5 = sshll.u32 %s591_s21, 4  ;;  %s385_s20 = int_to_ptr.vmem [resolvable:$true] %s384_s20  ;;  %s375_s5 = int_to_ptr.vmem [resolvable:$true] %s374_s5 }
  0x10   :  { %457 = vmatprep.subr.bf16.mxu0 %v587_v2  ;;  %s516_s22 = scalar_lea.vmem %s385_s20, 32  ;;  %p521_p1 = scmp.lt.s32.totalorder %s385_s20, %s385_s20 }
  0x11   :  { %p517_p0 = scmp.ne.s32.totalorder %s385_s20, %s516_s22  ;;  %p522_p2 = scmp.lt.s32.totalorder %s516_s22, %s516_s22 }
  0x13   :  { %458 = vmatpush3.bf16.msra.mxu0 %v502_v8  ;;  %p523_p3 = por %p522_p2, %p521_p1 }
  0x14   :  { %459 = vmatprep.subr.bf16.mxu0 %v587_v2 }
  0x15   :  { %p524_p4 = pnand %p523_p3, %p517_p0 }
  0x17   :  { %460 = vmatpush3.bf16.msra.mxu0 %v503_v9 }
  0x18   :  { %461 = vmatprep.subr.bf16.mxu0 %v587_v2 }
  0x1b   :  { %462 = vmatpush3.bf16.msra.mxu0 %v504_v10 }
  0x1c   :  { %463 = vmatprep.subr.bf16.mxu0 %v587_v2 }
  0x1f   :  { %464 = vmatpush3.bf16.msra.mxu0 %v505_v11 }
  0x81   :  { %v39_v13 = vpop.permute.xlu0 %38 }
  0x82   :  { %vm43_vm1 = vcmp.eq.s32.totalorder %v36_v14, %v39_v13 }
  0x85   :  { %v42_v15 = vpop.permute.xlu0 %41 }
  0x86   :  { %vm44_vm2 = vcmp.eq.s32.totalorder %v36_v14, %v42_v15 }
  0x87   :  { %vm424_vm3 = vmpackc.low %vm44_vm2, %vm43_vm1 }
  0x88   :  { %466 = vmatmul.mubr.msk.bf16.vlgmr.msra.gmra.mrb[0].mxu0 %vm424_vm3, %v589_v16 }
 0x15b   :  { %v155_v18 = vpop.f32.mrb[0].mxu0 }
 0x15c   :  { %v156_v19 = vadd.f32 %v415_v17, %v155_v18  ;;  %v467_v20 = vpop.f32.mrb[1].mxu0 }
 0x15d   :  { %v158_v21 = vpop.f32.mrb[2].mxu0 }
 0x15e   :  { %508 = vtanh.f32 %v156_v19  ;;  %v159_v22 = vadd.f32 %v415_v17, %v158_v21  ;;  %v468_v23 = vpop.f32.mrb[3].mxu0 }
 0x160   :  { %510 = vtanh.f32 %v159_v22 }
 0x168   :  { %v509_v24 = vpop.eup %508 }
 0x169   :  { %364 = vst.msk [vmem:[#allocation6] sm:$0xff] %vm234_vm4, %v509_v24 }
 0x16a   :  { %v511_v25 = vpop.eup %510 }
 0x16b   :  { %v165_v26 = vpack.c.bf16 %v511_v25, %v509_v24  ;;  %365 = vst.msk [vmem:[#allocation6 + $0x8] sm:$0xff] %vm234_vm4, %v511_v25 }
 0x16d   :  { %470 = vmatpush3.bf16.msra.mxu1 %v165_v26 }
 0x16e   :  { %475 = vmatprep.subr.bf16.mxu1 %v587_v2 }
 0x170   :  { %472 = vmatmul.mubr.msk.bf16.vlgmr.msra.gmra.mrb[0].mxu1 %vm166_vm5, %v164_v27 }
 0x171   :  { %476 = vmatpush3.bf16.msra.mxu1 %v506_v28  ;;  %479 = vmatprep.mubr.msk.bf16.mxu1 %vm588_vm0, %v587_v2 }
 0x172   :  { %477 = vmatprep.subr.bf16.mxu1 %v587_v2 }
 0x175   :  { %478 = vmatpush3.bf16.msra.mxu1 %v507_v29 }
 0x176   :  { %483 = vmatprep.subr.mxu1 %v587_v2 }
 0x243   :  { %v204_v30 = vpop.f32.mrb[0].mxu1 }
 0x244   :  { %v210_v31 = vpack.c.bf16 %v204_v30, %v204_v30  ;;  %v473_v32 = vpop.f32.mrb[1].mxu1  ;;  %363 = vst.msk [vmem:[#allocation4] sm:$0x3] %vm362_vm6, %v204_v30 }
 0x245   :  { %v207_v33 = vpop.f32.mrb[2].mxu1 }
 0x246   :  { %v474_v34 = vpop.f32.mrb[3].mxu1  ;;  %480 = vmatmul.mubr.msk.bf16.vlgmr.msra.gmra.mrb[4].mxu1 %vm234_vm4, %v210_v31 }
 0x247   :  { %485 = vmatprep.mubr.msk.f32.mxu1 %vm588_vm0, %v587_v2  ;;  %484 = vmatpush3.msra.mxu1 %v284_v35 }
 0x319   :  { %v272_v37 = vpop.f32.mrb[4].mxu1 }
 0x31a   :  { %v273_v38 = vadd.f32 %v427_v36, %v272_v37  ;;  %v481_v39 = vpop.f32.mrb[5].mxu1 }
 0x31b   :  { %v275_v40 = vpop.f32.mrb[6].mxu1 }
 0x31c   :  { %v431_v41 = vmul.f32 -1.442695, %v273_v38  ;;  %v482_v42 = vpop.f32.mrb[7].mxu1  ;;  %361 = vst.msk [vmem:[#allocation2] sm:$0x3] %vm360_vm7, %v273_v38 }
 0x31e   :  { %512 = vpow2.f32 %v431_v41 }
 0x328   :  { %v513_v43 = vpop.eup %512 }
 0x329   :  { %v281_v44 = vadd.f32 1.0, %v513_v43 }
 0x32b   :  { %514 = vrcp.f32 %v281_v44 }
 0x335   :  { %v515_v45 = vpop.eup %514 }
 0x336   :  { %486 = vmatmul.mubr.msk.f32.vlgmr.msra.gmra.mrb[8].mxu1 %vm285_vm8, %v515_v45 }
 0x337   :  { %527 = shalt.err (!%p524_p4)
}
 0x338   :  { %s528_s24 = scalar_lea.hbm %s769_s9, 32 }
 0x339   :  { %p529_p5 = scmp.ne.s32.totalorder %s769_s9, %s528_s24  ;;  %p532_p6 = scmp.lt.u32.totalorder %s528_s24, %s769_s9 }
 0x33b   :  { %p534_p7 = pnand %p532_p6, %p529_p5 }
 0x33d   :  { %537 = shalt.err (!%p534_p7)
}
 0x33e   :  { %387 = dma.vmem_to_hbm [thread:$0]  %s385_s20, 32, %s769_s9, [#allocation5]  }
 0x33f   :  { %s538_s11 = scalar_lea.vmem %s375_s5, 32  ;;  %p543_p9 = scmp.lt.s32.totalorder %s375_s5, %s375_s5 }
 0x340   :  { %p539_p8 = scmp.ne.s32.totalorder %s375_s5, %s538_s11  ;;  %p544_p10 = scmp.lt.s32.totalorder %s538_s11, %s538_s11 }
 0x342   :  { %p545_p11 = por %p544_p10, %p543_p9 }
 0x344   :  { %p546_p12 = pnand %p545_p11, %p539_p8 }
 0x346   :  { %549 = shalt.err (!%p546_p12)
}
 0x347   :  { %s550_s1 = scalar_lea.hbm %s768_s8, 32 }
 0x348   :  { %p551_p13 = scmp.ne.s32.totalorder %s768_s8, %s550_s1  ;;  %p554_p0 = scmp.lt.u32.totalorder %s550_s1, %s768_s8 }
 0x34a   :  { %p556_p1 = pnand %p554_p0, %p551_p13 }
 0x34c   :  { %559 = shalt.err (!%p556_p1)
}
 0x34d   :  { %377 = dma.vmem_to_hbm [thread:$0]  %s375_s5, 32, %s768_s8, [#allocation3]  }
 0x34e   :  { %s592_s3 = smov [#allocation6]  }
 0x34f   :  { %s393_s4 = sshll.u32 %s592_s3, 4  ;;  %s394_s4 = int_to_ptr.vmem [resolvable:$true] %s393_s4 }
 0x350   :  { %s560_s18 = scalar_lea.vmem %s394_s4, 256  ;;  %p565_p3 = scmp.lt.s32.totalorder %s394_s4, %s394_s4 }
 0x351   :  { %p561_p2 = scmp.ne.s32.totalorder %s394_s4, %s560_s18  ;;  %p566_p4 = scmp.lt.s32.totalorder %s560_s18, %s560_s18 }
 0x353   :  { %p567_p5 = por %p566_p4, %p565_p3 }
 0x355   :  { %p568_p6 = pnand %p567_p5, %p561_p2 }
 0x357   :  { %571 = shalt.err (!%p568_p6)
}
 0x358   :  { %s572_s20 = scalar_lea.hbm %s770_s10, 256 }
 0x359   :  { %p573_p7 = scmp.ne.s32.totalorder %s770_s10, %s572_s20  ;;  %p576_p8 = scmp.lt.u32.totalorder %s572_s20, %s770_s10 }
 0x35b   :  { %p578_p9 = pnand %p576_p8, %p573_p7 }
 0x35d   :  { %581 = shalt.err (!%p578_p9)
}
 0x35e   :  { %s593_s5 = smov 128   ;;  %s594_s23 = smov 8  }
 0x35f   :  { %399 = dma.vmem_to_hbm [thread:$0]  %s394_s4, 256, %s770_s10, [#allocation5], %s593_s5, %s593_s5, %s594_s23  }
 0x409   :  { %v355_v46 = vpop.f32.mrb[8].mxu1 }
 0x40a   :  { %359 = vst [vmem:[%s767_s7] sm:$0x3] %v355_v46  ;;  %v487_v47 = vpop.f32.mrb[9].mxu1 }
 0x40b   :  { %582 = dma.done.wait [#allocation3], 32  }
 0x40c   :  { %583 = vsyncadd [#allocation3], 4294967264 }
 0x40d   :  { %584 = dma.done.wait [#allocation5], 288  }
 0x40e   :  { %585 = vsyncadd [#allocation5], 4294967008 }
 0x40f   :  { %411 = vsyncpa [#allocation3], 1 }
 0x410   :  { %412 = vsyncpa [#allocation5], 1 }

</bundles_post_ra>
